<compile_context>
chip_gen: v7x
topology: tpu7x:2x2x1
jax: 0.10.0
libtpu: 0.0.40
codegen_flags: <defaults>
</compile_context>

<pallas_src>
import functools

import jax
import jax.numpy as jnp
import numpy as np
from jax.experimental import pallas as pl
from jax.experimental.pallas import tpu as pltpu


def _round_up(x, m):
    return ((x + m - 1) // m) * m


def _binarize(t):
    # deterministic BinaryNet sign (0 -> +1) so values are strictly +-1
    return jnp.where(t >= 0, 1.0, -1.0).astype(t.dtype)


def _unfold_patches(x, k, kpad):
    """jnp glue mirroring F.pad(..., value=-1) + unfold(1,k,1).unfold(2,k,1)."""
    B, D1, D2, C = x.shape
    xp = jnp.pad(x, ((0, 0), (kpad, kpad), (kpad, kpad), (0, 0)),
                 constant_values=-1.0)
    O1 = D1 + 2 * kpad - k + 1
    O2 = D2 + 2 * kpad - k + 1
    # result axes (B, O1, O2, C, p, q): flattening last 3 -> j = c*k*k + p*k + q
    unf = jnp.stack(
        [jnp.stack([xp[:, p:p + O1, q:q + O2, :] for q in range(k)], axis=-1)
         for p in range(k)],
        axis=-2)
    return unf, O1, O2


# ---------------------------------------------------------------------------
# Fast (binarized) path: single MXU matmul per block.
# ---------------------------------------------------------------------------
def _maj3_mxu_kernel(w_ref, a_ref, b_ref, o_ref):
    # w_ref: (c_out, Kp)       packed binary weights [w | -w1*w2*w3], bf16
    # a_ref: (Kp, block_n)     packed binary patches [u | u1*u2*u3]^T, bf16
    # b_ref: (c_out, 1)        bias, f32
    # o_ref: (c_out, block_n)  output tile, f32 (lane axis dense, mult of 128)
    acc = jnp.dot(w_ref[...], a_ref[...], preferred_element_type=jnp.float32)
    o_ref[...] = 1.5 * acc + b_ref[...]


# ---------------------------------------------------------------------------
# Fallback (rare `input.size(1) == 3` branch): input is NOT binarized, so the
# clamp is a genuine per-element nonlinearity -> keep the elementwise path.
# ---------------------------------------------------------------------------
def _maj3_elementwise_kernel(u_ref, w_ref, b_ref, o_ref, *, groups):
    # u_ref: (groups, block_n, H) raw patches; w_ref: (groups, c_out, H)
    acc = None
    for g in range(groups):                    # groups == k_w (static, small)
        term = u_ref[g][:, None, :] * w_ref[g][None, :, :]
        acc = term if acc is None else acc + term
    clamped = jnp.clip(acc, -1.0, 1.0)
    o_ref[...] = 3.0 * jnp.sum(clamped, axis=-1) + b_ref[...]


def maj3_pallas(x, weights, bias, k=3, block_n=512):
    B, D1, D2, C = x.shape
    c_out = weights.shape[0]
    kpad = k // 2
    binarize_input = (D1 != 3)                 # mirrors `if input.size(1) != 3`

    w_bin = _binarize(weights)                 # Binarize(weights.org)
    w_in, h_in = D2, C                         # module uses input.shape[2]/[3]
    K = C * k * k
    H = k * C                                  # group size (k_h * c_in)

    # TODO(synk): at large sizes, move the window gather (im2col) into the
    # kernel via halo-block DMA to avoid the ~k*k x HBM read amplification.

    if binarize_input:
        xb = _binarize(x)
        unf, O1, O2 = _unfold_patches(xb, k, kpad)     # im2col glue
        N = B * O1 * O2

        U = unf.reshape(N, K)                          # (N, K), entries +-1
        U3 = U.reshape(N, k, H)
        u_prod = U3[:, 0] * U3[:, 1] * U3[:, 2]        # (N, H)
        A = jnp.concatenate([U, u_prod], axis=1)       # (N, K + H)

        W3 = w_bin.reshape(c_out, k, H)
        w_prod = W3[:, 0] * W3[:, 1] * W3[:, 2]        # (c_out, H)
        Wp = jnp.concatenate([w_bin, -w_prod], axis=1)  # (c_out, K + H)

        Kp = _round_up(K + H, 128)                     # lane-dense contraction
        block_n = min(block_n, _round_up(N, 128))      # lane-dense output axis
        Np = _round_up(N, block_n)

        # bf16 operands (+-1 is exact in bf16), f32 accumulation on the MXU.
        a_t = jnp.zeros((Kp, Np), jnp.bfloat16)
        a_t = a_t.at[:K + H, :N].set(A.T.astype(jnp.bfloat16))
        w_pack = jnp.zeros((c_out, Kp), jnp.bfloat16)
        w_pack = w_pack.at[:, :K + H].set(Wp.astype(jnp.bfloat16))
        b2 = bias.reshape(c_out, 1).astype(jnp.float32)

        grid = (Np // block_n,)
        out_cn = pl.pallas_call(
            _maj3_mxu_kernel,
            out_shape=jax.ShapeDtypeStruct((c_out, Np), jnp.float32),
            grid=grid,
            in_specs=[
                pl.BlockSpec((c_out, Kp), lambda i: (0, 0)),    # weights resident
                pl.BlockSpec((Kp, block_n), lambda i: (0, i)),  # stream patches
                pl.BlockSpec((c_out, 1), lambda i: (0, 0)),     # bias resident
            ],
            out_specs=pl.BlockSpec((c_out, block_n), lambda i: (0, i)),
            compiler_params=pltpu.CompilerParams(
                dimension_semantics=("parallel",),   # shard grid over TCs (v7x)
                vmem_limit_bytes=32 * 1024 * 1024,
            ),
        )(w_pack, a_t, b2)

        out = out_cn[:, :N].reshape(c_out, -1, w_in, h_in)
        out = jnp.transpose(out, (1, 0, 2, 3))         # -> (B, c_out, W, H)
        return out

    # ---- non-binarized branch (D1 == 3): elementwise clamp path ----
    unf, O1, O2 = _unfold_patches(x, k, kpad)
    N = B * O1 * O2
    Ug = jnp.transpose(unf.reshape(N, k, H), (1, 0, 2))           # (k, N, H)
    Wg = jnp.transpose(w_bin.reshape(c_out, k, H), (1, 0, 2))     # (k, c_out, H)
    b2 = bias.reshape(1, c_out)

    bn = 64
    if N % bn != 0:
        bn = N
    out_flat = pl.pallas_call(
        functools.partial(_maj3_elementwise_kernel, groups=k),
        out_shape=jax.ShapeDtypeStruct((N, c_out), jnp.float32),
        grid=(N // bn,),
        in_specs=[
            pl.BlockSpec((k, bn, H), lambda i: (0, i, 0)),
            pl.BlockSpec((k, c_out, H), lambda i: (0, 0, 0)),
            pl.BlockSpec((1, c_out), lambda i: (0, 0)),
        ],
        out_specs=pl.BlockSpec((bn, c_out), lambda i: (i, 0)),
        compiler_params=pltpu.CompilerParams(
            dimension_semantics=("parallel",)),
    )(Ug, Wg, b2)

    out = out_flat.reshape(-1, w_in, h_in, c_out)
    out = jnp.transpose(out, (0, 3, 1, 2))
    return out


def maj3_reference(x, weights, bias, k=3):
    """Pure-JAX line-by-line mirror of the PyTorch forward (for checking)."""
    B, D1, D2, C = x.shape
    c_out = weights.shape[0]
    kpad = k // 2
    if D1 != 3:
        x = _binarize(x)
    w = _binarize(weights)
    w_in, h_in = D2, C
    unf, O1, O2 = _unfold_patches(x, k, kpad)
    U = unf.reshape(-1, k * k * C)
    P = U[:, None, :] * w[None, :, :]                  # 'bj,aj->baj'
    inter = P.reshape(-1, k, k * C).sum(axis=1)
    out = (3.0 * jnp.clip(inter, -1.0, 1.0)).sum(axis=1)
    out = out.reshape(-1, w_in, h_in, c_out)
    out = out + bias.reshape(1, 1, 1, -1)
    out = jnp.transpose(out, (0, 3, 1, 2))
    return out


if __name__ == "__main__":
    # batch=2, spatial 8x8, c_in=8 (== spatial, so the module's internal
    # w_in/h_in indexing is self-consistent), c_out=8, kernel=3.
    B, S, C_in, C_out, K = 2, 8, 8, 8, 3

    key = jax.random.PRNGKey(0)
    kx, kw, kb = jax.random.split(key, 3)
    # reset_parameters(): random {-1, +1}
    weights = (jax.random.randint(kw, (C_out, K * K * C_in), 0, 2)
               .astype(jnp.float32) * 2.0 - 1.0)
    bias = jax.random.randint(kb, (C_out,), 0, 2).astype(jnp.float32) * 2.0 - 1.0
    x = jax.random.normal(kx, (B, S, S, C_in), dtype=jnp.float32)

    out = jax.block_until_ready(maj3_pallas(x, weights, bias, k=K))
    ref = jax.block_until_ready(maj3_reference(x, weights, bias, k=K))
    np.testing.assert_allclose(np.asarray(out), np.asarray(ref), rtol=0, atol=1e-5)
    assert out.shape == (B, C_out, S, S), out.shape

    print("KERNEL_OK")
</pallas_src>

<mosaic_0001>
module attributes {stable_mosaic.version = 11 : i64} {
  func.func @_maj3_mxu_kernel(%arg0: i32, %arg1: memref<8x128xbf16, #tpu.memory_space<vmem>>, %arg2: memref<128x128xbf16, #tpu.memory_space<vmem>>, %arg3: memref<8x1xf32, #tpu.memory_space<vmem>>, %arg4: memref<8x128xf32, #tpu.memory_space<vmem>>) attributes {dimension_semantics = [#tpu.dimension_semantics<parallel>], iteration_bounds = array<i64: 1>, scalar_prefetch = 0 : i64, scratch_operands = 0 : i64, tpu.core_type = #tpu.core_type<tc>, window_params = [{pipeline_mode = #tpu.pipeline_mode<synchronous>, transform_indices = @transform_0, window_bounds = array<i64: 8, 128>}, {transform_indices = @transform_1, window_bounds = array<i64: 128, 128>}, {pipeline_mode = #tpu.pipeline_mode<synchronous>, transform_indices = @transform_2, window_bounds = array<i64: 8, 1>}, {transform_indices = @transform_3, window_bounds = array<i64: 8, 128>}]} {
    %c0 = arith.constant 0 : index
    %c0_0 = arith.constant 0 : index
    %0 = vector.load %arg1[%c0, %c0_0] : memref<8x128xbf16, #tpu.memory_space<vmem>>, vector<8x128xbf16>
    %c0_1 = arith.constant 0 : index
    %c0_2 = arith.constant 0 : index
    %1 = vector.load %arg2[%c0_1, %c0_2] : memref<128x128xbf16, #tpu.memory_space<vmem>>, vector<128x128xbf16>
    %cst = arith.constant dense<0.000000e+00> : vector<8x128xf32>
    %2 = tpu.matmul %0, %1, %cst {dimension_numbers = #tpu.dot_dimension_numbers<[1], [0], [0], [1], [0, 0, 1, 1], [], []>} : vector<8x128xbf16>, vector<128x128xbf16>, vector<8x128xf32> -> vector<8x128xf32>
    %cst_3 = arith.constant 1.500000e+00 : f32
    %3 = vector.broadcast %cst_3 : f32 to vector<8x128xf32>
    %4 = arith.mulf %3, %2 : vector<8x128xf32>
    %c0_4 = arith.constant 0 : index
    %c0_5 = arith.constant 0 : index
    %5 = vector.load %arg3[%c0_4, %c0_5] : memref<8x1xf32, #tpu.memory_space<vmem>>, vector<8x1xf32>
    %6 = vector.broadcast %5 : vector<8x1xf32> to vector<8x128xf32>
    %7 = arith.addf %4, %6 : vector<8x128xf32>
    %c0_6 = arith.constant 0 : index
    %c0_7 = arith.constant 0 : index
    %8 = vector.load %arg4[%c0_6, %c0_7] : memref<8x128xf32, #tpu.memory_space<vmem>>, vector<8x128xf32>
    tpu.vector_store %arg4[%c0_6, %c0_7], %7 {strides = array<i32>} : memref<8x128xf32, #tpu.memory_space<vmem>>, vector<8x128xf32>,
    return
  }
  func.func @transform_0(%arg0: i32) -> (i32, i32) {
    %c0_i32 = arith.constant 0 : i32
    %c0_i32_0 = arith.constant 0 : i32
    %c0_i32_1 = arith.constant 0 : i32
    return %c0_i32, %c0_i32_0 : i32, i32
  }
  func.func @transform_1(%arg0: i32) -> (i32, i32) {
    %c0_i32 = arith.constant 0 : i32
    %c0_i32_0 = arith.constant 0 : i32
    return %c0_i32, %arg0 : i32, i32
  }
  func.func @transform_2(%arg0: i32) -> (i32, i32) {
    %c0_i32 = arith.constant 0 : i32
    %c0_i32_0 = arith.constant 0 : i32
    %c0_i32_1 = arith.constant 0 : i32
    return %c0_i32, %c0_i32_0 : i32, i32
  }
  func.func @transform_3(%arg0: i32) -> (i32, i32) {
    %c0_i32 = arith.constant 0 : i32
    %c0_i32_0 = arith.constant 0 : i32
    return %c0_i32, %arg0 : i32, i32
  }
}

</mosaic_0001>

<bundles_post_ra>
// kernel: tpu_custom_call.1
= control target key start
LH: loop header
LB: loop body
LE: loop exit
PB: predicated region body
PF: predicated region fallthrough
CT: control target
= control target key end

     0   :  { %8 = vsyncpa [#allocation3], 0  ;;  %s317_s0 = inlined_call_operand.vmem [shape: bf16[8,128], index: 0, kind: input, shape index: {}]   ;;  %s318_s1 = inlined_call_operand.hbm [shape: bf16[128,128], index: 1, kind: input, shape index: {}]   ;;  %s319_s2 = inlined_call_operand.vmem [shape: f32[8,1], index: 2, kind: input, shape index: {}]   ;;  %s320_s3 = inlined_call_operand.hbm [shape: f32[8,128], index: 3, kind: output, shape index: {}]  }
   0x1   :  { %9 = vsyncpa [#allocation4], 0  ;;  %s260_s12 = smov [#allocation2]   ;;  %s212_s16 = scalar_lea.hbm %s318_s1, 1024 }
   0x2   :  { %s17_s13 = sshll.u32 %s260_s12, 4  ;;  %p213_p0 = scmp.ne.s32.totalorder %s318_s1, %s212_s16  ;;  %s18_s13 = int_to_ptr.vmem [resolvable:$true] %s17_s13 }
   0x3   :  { %p216_p1 = scmp.lt.u32.totalorder %s212_s16, %s318_s1 }
   0x5   :  { %p218_p2 = pnand %p216_p1, %p213_p0 }
   0x7   :  { %221 = shalt.err (!%p218_p2)
}
   0x8   :  { %s222_s21 = scalar_lea.vmem %s18_s13, 1024  ;;  %p227_p4 = scmp.lt.s32.totalorder %s18_s13, %s18_s13 }
   0x9   :  { %p223_p3 = scmp.ne.s32.totalorder %s18_s13, %s222_s21  ;;  %p228_p5 = scmp.lt.s32.totalorder %s222_s21, %s222_s21 }
   0xb   :  { %p229_p6 = por %p228_p5, %p227_p4 }
   0xd   :  { %p230_p7 = pnand %p229_p6, %p223_p3 }
   0xf   :  { %233 = shalt.err (!%p230_p7)
}
  0x10   :  { %s261_s22 = smov 64   ;;  %s262_s23 = smov 4  }
  0x11   :  { %23 = dma.hbm_to_vmem [thread:$0]  %s318_s1, 1024, %s18_s13, [#allocation3], %s261_s22, %s261_s22, %s262_s23  }
  0x12   :  { %256 = dma.done.wait [#allocation3], 1024  }
  0x13   :  { %257 = vsyncadd [#allocation3], 4294966272  ;;  %v263_v0 = vmov 0.0   ;;  %vm264_vm0 = vmmov 0   ;;  %v265_v1 = vmov 0   ;;  %v204_v2 = vld [vmem:[#allocation2] sm:$0xff]  }
  0x14   :  { %176 = vmatprep.subr.bf16.mxu0 %v263_v0  ;;  %192 = vmatprep.mubr.msk.bf16.mxu0 %vm264_vm0, %v263_v0  ;;  %v205_v3 = vld [vmem:[#allocation2 + $0x8] sm:$0xff]   ;;  %v206_v4 = vld [vmem:[#allocation2 + $0x10] sm:$0xff]   ;;  %v136_v5 = vld [vmem:[%s319_s2] sm:$0xff]  ;;  %s266_s2 = smov [#allocation5]  }
  0x15   :  { %203 = vset.pattern.permute.xlu0 %v265_v1  ;;  %177 = vmatpush3.bf16.msra.mxu0 %v204_v2  ;;  %v207_v6 = vld [vmem:[#allocation2 + $0x18] sm:$0xff]   ;;  %v208_v7 = vld [vmem:[#allocation2 + $0x20] sm:$0xff]   ;;  %v209_v8 = vld [vmem:[#allocation2 + $0x28] sm:$0xff]   ;;  %s150_s29 = sshll.u32 %s266_s2, 4  ;;  %s151_s29 = int_to_ptr.vmem [resolvable:$true] %s150_s29 }
  0x16   :  { %178 = vmatprep.subr.bf16.mxu0 %v263_v0  ;;  %139 = vperm.xlu0 %203, %v136_v5   ;;  %v210_v9 = vld [vmem:[#allocation2 + $0x30] sm:$0xff]   ;;  %v211_v10 = vld [vmem:[#allocation2 + $0x38] sm:$0xff]   ;;  %v30_v11 = vld [vmem:[%s317_s0] sm:$0xf]  ;;  %s234_s30 = scalar_lea.vmem %s151_s29, 128  ;;  %p239_p9 = scmp.lt.s32.totalorder %s151_s29, %s151_s29 }
  0x17   :  { %p235_p8 = scmp.ne.s32.totalorder %s151_s29, %s234_s30  ;;  %p240_p10 = scmp.lt.s32.totalorder %s234_s30, %s234_s30 }
  0x19   :  { %179 = vmatpush3.bf16.msra.mxu0 %v205_v3  ;;  %p241_p11 = por %p240_p10, %p239_p9 }
  0x1a   :  { %180 = vmatprep.subr.bf16.mxu0 %v263_v0 }
  0x1b   :  { %p242_p12 = pnand %p241_p11, %p235_p8 }
  0x1d   :  { %181 = vmatpush3.bf16.msra.mxu0 %v206_v4 }
  0x1e   :  { %182 = vmatprep.subr.bf16.mxu0 %v263_v0 }
  0x21   :  { %183 = vmatpush3.bf16.msra.mxu0 %v207_v6 }
  0x22   :  { %184 = vmatprep.subr.bf16.mxu0 %v263_v0 }
  0x25   :  { %185 = vmatpush3.bf16.msra.mxu0 %v208_v7 }
  0x26   :  { %186 = vmatprep.subr.bf16.mxu0 %v263_v0 }
  0x29   :  { %187 = vmatpush3.bf16.msra.mxu0 %v209_v8 }
  0x2a   :  { %188 = vmatprep.subr.bf16.mxu0 %v263_v0 }
  0x2d   :  { %189 = vmatpush3.bf16.msra.mxu0 %v210_v9 }
  0x2e   :  { %190 = vmatprep.subr.bf16.mxu0 %v263_v0 }
  0x31   :  { %191 = vmatpush3.bf16.msra.mxu0 %v211_v10 }
  0x34   :  { %193 = vmatmul.mubr.bf16.vlgmr.msra.gmra.mrb[0].mxu0 %v30_v11 }
  0x95   :  { %v140_v13 = vpop.permute.xlu0 %139 }
 0x107   :  { %v129_v12 = vpop.f32.mrb[0].mxu0 }
 0x108   :  { %v135_v14 = vmul.f32 1.5, %v129_v12  ;;  %v194_v15 = vpop.f32.mrb[1].mxu0 }
 0x109   :  { %v132_v16 = vpop.f32.mrb[2].mxu0 }
 0x10a   :  { %v142_v17 = vadd.f32 %v140_v13, %v135_v14  ;;  %v195_v18 = vpop.f32.mrb[3].mxu0 }
 0x10c   :  { %143 = vst [vmem:[#allocation5] sm:$0xff] %v142_v17 }
 0x10d   :  { %245 = shalt.err (!%p242_p12)
}
 0x10e   :  { %s246_s5 = scalar_lea.hbm %s320_s3, 128 }
 0x10f   :  { %p247_p13 = scmp.ne.s32.totalorder %s320_s3, %s246_s5  ;;  %p250_p0 = scmp.lt.u32.totalorder %s246_s5, %s320_s3 }
 0x111   :  { %p252_p1 = pnand %p250_p0, %p247_p13 }
 0x113   :  { %255 = shalt.err (!%p252_p1)
}
 0x114   :  { %153 = dma.vmem_to_hbm [thread:$0]  %s151_s29, 128, %s320_s3, [#allocation4]  }
 0x115   :  { %258 = dma.done.wait [#allocation4], 128  }
 0x116   :  { %259 = vsyncadd [#allocation4], 4294967168 }
 0x117   :  { %157 = vsyncpa [#allocation3], 1 }
 0x118   :  { %158 = vsyncpa [#allocation4], 1 }

</bundles_post_ra>
